<compile_context>
chip_gen: v7x
topology: tpu7x:2x2x1
jax: 0.10.0
libtpu: 0.0.40
codegen_flags: <defaults>
</compile_context>

<pallas_src>
import functools

import jax
import jax.numpy as jnp
from jax.experimental import pallas as pl
from jax.experimental.pallas import tpu as pltpu

LANE = 128     # TPU lane width (last dim of every block).
SUBLANE = 8    # f32 sublane count (vreg is 8 x 128).


def _cdiv(a, b):
    return -(-a // b)


def _ceil_to(x, m):
    return ((x + m - 1) // m) * m


def _sublane_multiple(dtype):
    # Minimum sublane tile for the dtype: f32 -> 8, bf16/f16 -> 16, int8/fp8 -> 32.
    return max(SUBLANE, 32 // max(int(jnp.dtype(dtype).itemsize), 1))


def _focal_elem(x, t, *, alpha, gamma, logits, binary_targets):
    """Elementwise focal loss (matches torch semantics incl. log clamp at -100).

    binary_targets=True assumes t in {0, 1} and uses a cheaper (fewer
    transcendentals) but mathematically equivalent formulation.
    """
    x = x.astype(jnp.float32)
    t = t.astype(jnp.float32)
    if logits:
        if binary_targets:
            # z = (2t - 1) * x for t in {0,1};  bce = softplus(-z), pt = sigmoid(z).
            z = jnp.where(t > 0.5, x, -x)
            e = jnp.exp(-jnp.abs(z))
            bce = jnp.maximum(-z, 0.0) + jnp.log1p(e)
            r = 1.0 / (1.0 + e)
            pt = jnp.where(z >= 0.0, r, e * r)
        else:
            # F.binary_cross_entropy_with_logits, numerically stable form.
            bce = jnp.maximum(x, 0.0) - x * t + jnp.log1p(jnp.exp(-jnp.abs(x)))
            pt = jnp.exp(-bce)
    else:
        if binary_targets:
            # Only one log per element.
            p = jnp.where(t > 0.5, x, 1.0 - x)
            bce = -jnp.maximum(jnp.log(p), -100.0)
            pt = p
        else:
            # F.binary_cross_entropy clamps log terms at -100 like PyTorch does.
            logp = jnp.maximum(jnp.log(x), -100.0)
            log1mp = jnp.maximum(jnp.log(1.0 - x), -100.0)
            bce = -(t * logp + (1.0 - t) * log1mp)
            pt = jnp.exp(-bce)
    one_minus_pt = 1.0 - pt
    g = float(gamma)
    if g.is_integer() and 0.0 <= g <= 16.0:
        gi = int(g)
        if gi == 0:
            w = jnp.ones_like(bce)
        else:
            w = one_minus_pt
            for _ in range(gi - 1):
                w = w * one_minus_pt
    else:
        w = one_minus_pt ** g
    return float(alpha) * w * bce


def _focal_sum_kernel(x_ref, t_ref, o_ref, *, alpha, gamma, logits,
                      binary_targets, rt, n_steps, n_tiles, n_valid_last,
                      needs_mask, has_overhang):
    """Grid = (nsplit, n_steps).  Axis 0 is parallel (megacore split), axis 1
    walks row tiles, accumulating directly into the resident (8, 128) f32
    output block (its index_map ignores the reduction axis)."""
    i = pl.program_id(0)
    j = pl.program_id(1)
    tile_idx = i * n_steps + j

    @pl.when(j == 0)
    def _():
        o_ref[...] = jnp.zeros_like(o_ref)

    f = _focal_elem(x_ref[...], t_ref[...], alpha=alpha, gamma=gamma,
                    logits=logits, binary_targets=binary_targets)

    def _accumulate(vals):
        # Vreg-shaped accumulation: sum over the leading (non-layout) axis,
        # pure VPU adds; the tiny cross-lane reduce happens outside the kernel.
        o_ref[...] += jnp.sum(vals.reshape(rt // SUBLANE, SUBLANE, LANE), axis=0)

    if needs_mask:
        # Full tiles: plain accumulation.
        @pl.when(tile_idx < n_tiles - 1)
        def _():
            _accumulate(f)

        # Last real tile: mask ragged rows / padded lanes with tile-local
        # indices (fits int32, only runs on one grid step).
        @pl.when(tile_idx == n_tiles - 1)
        def _():
            rows = jax.lax.broadcasted_iota(jnp.int32, f.shape, 0)
            lanes = jax.lax.broadcasted_iota(jnp.int32, f.shape, 1)
            masked = jnp.where(rows * LANE + lanes < n_valid_last, f, 0.0)
            _accumulate(masked)
        # Overhang step (tile_idx == n_tiles, when nsplit*n_steps > n_tiles)
        # falls through both branches -> contributes nothing.
    elif has_overhang:
        @pl.when(tile_idx < n_tiles)
        def _():
            _accumulate(f)
    else:
        _accumulate(f)


def _focal_elemwise_kernel(x_ref, t_ref, o_ref, *, alpha, gamma, logits,
                           binary_targets):
    o_ref[...] = _focal_elem(x_ref[...], t_ref[...], alpha=alpha, gamma=gamma,
                             logits=logits,
                             binary_targets=binary_targets).astype(o_ref.dtype)


def focal_loss(inputs, targets, *, alpha=1.0, gamma=2.0, logits=False,
               reduce=True, binary_targets=False, row_tile=8192):
    """Pallas implementation of FocalLoss.forward.

    inputs/targets: same-shaped arrays (probabilities if logits=False).
    Returns a scalar (reduce=True) or an array of inputs.shape (reduce=False).
    Set binary_targets=True when targets are strictly {0,1} for a cheaper
    (fewer transcendentals) but equivalent formulation.
    """
    assert targets.shape == inputs.shape
    orig_shape = inputs.shape
    orig_dtype = inputs.dtype
    n_total = int(inputs.size)

    in_isz = int(jnp.dtype(inputs.dtype).itemsize)
    tg_isz = int(jnp.dtype(targets.dtype).itemsize)
    out_isz = int(jnp.dtype(orig_dtype).itemsize)
    sub = max(_sublane_multiple(inputs.dtype), _sublane_multiple(targets.dtype))

    rows = _cdiv(n_total, LANE)
    rt = int(row_tile)
    rt = max(sub, min(rt, _ceil_to(rows, sub)))
    rt = _ceil_to(rt, sub)

    if rt >= rows:
        # Single block: block shape must equal the (row-aligned) full array.
        rows_total = rt
    else:
        # Multi-tile: keep the natural row count, last block may be ragged.
        rows_total = rows

    n_padded = rows_total * LANE
    x = inputs.reshape(-1)
    t = targets.reshape(-1)
    if n_padded != n_total:
        # Only happens when n_total % 128 != 0 or the array fits in one block.
        pad = n_padded - n_total
        # 0.5 / 0.0 are safe pad values for both logits modes (no inf/nan);
        # the reduce kernel masks them out and the elementwise path slices
        # them off.
        x = jnp.pad(x, (0, pad), constant_values=0.5)
        t = jnp.pad(t, (0, pad), constant_values=0.0)
    # Keep native dtype -> no extra HBM traffic from a wrapper upcast.
    x2 = x.reshape(rows_total, LANE)
    t2 = t.reshape(rows_total, LANE)

    n_tiles = _cdiv(rows_total, rt)
    flops_per_elem = 20
    trans_per_elem = 1 if (binary_targets and not logits) else 3

    if reduce:
        # Always split the reduction 2 ways across the leading parallel axis
        # when possible so v7x megacore gets both TensorCores working; an odd
        # tile count produces one overhang step that is clamped + skipped.
        nsplit = 2 if n_tiles >= 2 else 1
        n_steps = _cdiv(n_tiles, nsplit)
        has_overhang = nsplit * n_steps > n_tiles
        n_valid_last = n_total - (n_tiles - 1) * rt * LANE
        needs_mask = n_valid_last < rt * LANE

        def in_map(i, j):
            tidx = i * n_steps + j
            if has_overhang:
                tidx = jnp.minimum(tidx, n_tiles - 1)
            return (tidx, 0)

        kernel = functools.partial(
            _focal_sum_kernel, alpha=float(alpha), gamma=float(gamma),
            logits=bool(logits), binary_targets=bool(binary_targets),
            rt=rt, n_steps=n_steps, n_tiles=n_tiles,
            n_valid_last=n_valid_last, needs_mask=needs_mask,
            has_overhang=has_overhang)

        # 2 inputs x 2 pipeline buffers x block, plus headroom.
        vmem_need = 2 * rt * LANE * (in_isz + tg_isz)
        vmem_limit = int(min(vmem_need + (8 << 20), 64 << 20))
        cost = pl.CostEstimate(
            flops=flops_per_elem * n_total,
            transcendentals=trans_per_elem * n_total,
            bytes_accessed=n_total * (in_isz + tg_isz)
            + nsplit * SUBLANE * LANE * 4)

        partials = pl.pallas_call(
            kernel,
            out_shape=jax.ShapeDtypeStruct((nsplit * SUBLANE, LANE),
                                           jnp.float32),
            grid=(nsplit, n_steps),
            in_specs=[
                pl.BlockSpec((rt, LANE), in_map),
                pl.BlockSpec((rt, LANE), in_map),
            ],
            out_specs=pl.BlockSpec((SUBLANE, LANE), lambda i, j: (i, 0)),
            compiler_params=pltpu.CompilerParams(
                dimension_semantics=("parallel", "arbitrary"),
                vmem_limit_bytes=vmem_limit),
            cost_estimate=cost,
        )(x2, t2)
        # Tiny final cross-lane reduce (<= 8 KiB) done in XLA; divide by the
        # TRUE element count.
        return (jnp.sum(partials, dtype=jnp.float32) / n_total).astype(orig_dtype)
    else:
        kernel = functools.partial(
            _focal_elemwise_kernel, alpha=float(alpha), gamma=float(gamma),
            logits=bool(logits), binary_targets=bool(binary_targets))

        # (2 inputs + 1 output) x 2 pipeline buffers x block, plus headroom.
        vmem_need = 2 * rt * LANE * (in_isz + tg_isz + out_isz)
        vmem_limit = int(min(vmem_need + (8 << 20), 64 << 20))
        cost = pl.CostEstimate(
            flops=flops_per_elem * n_total,
            transcendentals=trans_per_elem * n_total,
            bytes_accessed=n_total * (in_isz + tg_isz + out_isz))

        out = pl.pallas_call(
            kernel,
            out_shape=jax.ShapeDtypeStruct((rows_total, LANE), orig_dtype),
            grid=(n_tiles,),
            in_specs=[
                pl.BlockSpec((rt, LANE), lambda i: (i, 0)),
                pl.BlockSpec((rt, LANE), lambda i: (i, 0)),
            ],
            out_specs=pl.BlockSpec((rt, LANE), lambda i: (i, 0)),
            compiler_params=pltpu.CompilerParams(
                dimension_semantics=("parallel",),
                vmem_limit_bytes=vmem_limit),
            cost_estimate=cost,
        )(x2, t2)
        out = out.reshape(-1)
        if n_padded != n_total:
            out = out[:n_total]
        return out.reshape(orig_shape)


def _focal_loss_ref(inputs, targets, alpha=1.0, gamma=2.0, logits=False,
                    reduce=True):
    # Pure-JAX reference (always uses the general soft-target formula).
    f = _focal_elem(inputs, targets, alpha=alpha, gamma=gamma, logits=logits,
                    binary_targets=False)
    return jnp.mean(f) if reduce else f


if __name__ == "__main__":
    key = jax.random.PRNGKey(0)
    k1, k2, k3, k4 = jax.random.split(key, 4)

    # 1) Module-default path: probabilities, reduce=True, NCHW-like shape.
    shape = (2, 4, 16, 16)
    probs = jax.nn.sigmoid(jax.random.normal(k1, shape, dtype=jnp.float32))
    tgt = jax.random.bernoulli(k2, 0.3, shape).astype(jnp.float32)

    loss = jax.block_until_ready(focal_loss(probs, tgt))
    ref = _focal_loss_ref(probs, tgt)
    assert jnp.allclose(loss, ref, rtol=1e-5, atol=1e-6), (loss, ref)

    loss_e = jax.block_until_ready(focal_loss(probs, tgt, reduce=False))
    ref_e = _focal_loss_ref(probs, tgt, reduce=False)
    assert jnp.allclose(loss_e, ref_e, rtol=1e-5, atol=1e-6)

    # 2) logits=True on a non-128-divisible shape (exercises lane pad + mask),
    #    both general and binary-target fast paths.
    shp2 = (3, 5, 7)
    x_log = jax.random.normal(k3, shp2, dtype=jnp.float32)
    t_log = jax.random.bernoulli(k4, 0.5, shp2).astype(jnp.float32)

    l2 = jax.block_until_ready(focal_loss(x_log, t_log, alpha=0.25, logits=True))
    r2 = _focal_loss_ref(x_log, t_log, alpha=0.25, logits=True)
    assert jnp.allclose(l2, r2, rtol=1e-5, atol=1e-6), (l2, r2)

    l2f = jax.block_until_ready(
        focal_loss(x_log, t_log, alpha=0.25, logits=True, binary_targets=True))
    assert jnp.allclose(l2f, r2, rtol=1e-4, atol=1e-6), (l2f, r2)

    l2e = jax.block_until_ready(
        focal_loss(x_log, t_log, alpha=0.25, logits=True, reduce=False))
    r2e = _focal_loss_ref(x_log, t_log, alpha=0.25, logits=True, reduce=False)
    assert jnp.allclose(l2e, r2e, rtol=1e-5, atol=1e-6)

    # 3) Multi-tile with an ODD tile count (exercises the always-2-way core
    #    split + clamped overhang step), ragged last block and lane padding.
    shp3 = (39, 130)  # 5070 elements, not a multiple of 128
    xp = jax.nn.sigmoid(jax.random.normal(k1, shp3, dtype=jnp.float32))
    tp = jax.random.bernoulli(k2, 0.4, shp3).astype(jnp.float32)

    l3 = jax.block_until_ready(focal_loss(xp, tp, row_tile=16))  # 3 tiles
    r3 = _focal_loss_ref(xp, tp)
    assert jnp.allclose(l3, r3, rtol=1e-5, atol=1e-6), (l3, r3)

    l3f = jax.block_until_ready(
        focal_loss(xp, tp, row_tile=16, binary_targets=True))
    assert jnp.allclose(l3f, r3, rtol=1e-4, atol=1e-6), (l3f, r3)

    l3e = jax.block_until_ready(focal_loss(xp, tp, row_tile=16, reduce=False))
    r3e = _focal_loss_ref(xp, tp, reduce=False)
    assert jnp.allclose(l3e, r3e, rtol=1e-5, atol=1e-6)

    # 4) bf16 inputs (exercises the (16,128) sublane multiple for sub-32-bit
    #    dtypes; math still accumulates in f32).
    shp4 = (4, 1024)
    xb = jax.nn.sigmoid(jax.random.normal(k3, shp4, dtype=jnp.float32)).astype(
        jnp.bfloat16)
    tb = jax.random.bernoulli(k4, 0.3, shp4).astype(jnp.bfloat16)
    l4 = jax.block_until_ready(focal_loss(xb, tb))
    r4 = _focal_loss_ref(xb, tb)
    assert jnp.allclose(l4.astype(jnp.float32), r4, rtol=2e-2, atol=1e-3), (l4, r4)

    print("KERNEL_OK")
</pallas_src>

<mosaic_0001>
module attributes {stable_mosaic.version = 11 : i64} {
  func.func @_focal_sum_kernel(%arg0: i32, %arg1: i32, %arg2: memref<16x128xf32, #tpu.memory_space<vmem>>, %arg3: memref<16x128xf32, #tpu.memory_space<vmem>>, %arg4: memref<8x128xf32, #tpu.memory_space<vmem>>) attributes {dimension_semantics = [#tpu.dimension_semantics<parallel>, #tpu.dimension_semantics<arbitrary>], iteration_bounds = array<i64: 1, 1>, scalar_prefetch = 0 : i64, scratch_operands = 0 : i64, tpu.core_type = #tpu.core_type<tc>, window_params = [{transform_indices = @transform_0, window_bounds = array<i64: 16, 128>}, {transform_indices = @transform_1, window_bounds = array<i64: 16, 128>}, {transform_indices = @transform_2, window_bounds = array<i64: 8, 128>}]} {
    %c0_i32 = arith.constant 0 : i32
    %0 = arith.cmpi eq, %arg1, %c0_i32 : i32
    %1 = arith.extui %0 : i1 to i32
    %c0_i32_0 = arith.constant 0 : i32
    %2 = arith.cmpi ne, %1, %c0_i32_0 : i32
    scf.if %2 {
      %cst_16 = arith.constant 0.000000e+00 : f32
      %34 = vector.broadcast %cst_16 : f32 to vector<8x128xf32>
      %c0_17 = arith.constant 0 : index
      %c0_18 = arith.constant 0 : index
      %35 = vector.load %arg4[%c0_17, %c0_18] : memref<8x128xf32, #tpu.memory_space<vmem>>, vector<8x128xf32>
      tpu.vector_store %arg4[%c0_17, %c0_18], %34 {strides = array<i32>} : memref<8x128xf32, #tpu.memory_space<vmem>>, vector<8x128xf32>,
    } else {
    }
    %c0 = arith.constant 0 : index
    %c0_1 = arith.constant 0 : index
    %3 = vector.load %arg2[%c0, %c0_1] : memref<16x128xf32, #tpu.memory_space<vmem>>, vector<16x128xf32>
    %c0_2 = arith.constant 0 : index
    %c0_3 = arith.constant 0 : index
    %4 = vector.load %arg3[%c0_2, %c0_3] : memref<16x128xf32, #tpu.memory_space<vmem>>, vector<16x128xf32>
    %5 = math.log %3 : vector<16x128xf32>
    %cst = arith.constant -1.000000e+02 : f32
    %6 = vector.broadcast %cst : f32 to vector<16x128xf32>
    %7 = arith.maximumf %5, %6 : vector<16x128xf32>
    %cst_4 = arith.constant 1.000000e+00 : f32
    %8 = vector.broadcast %cst_4 : f32 to vector<16x128xf32>
    %9 = arith.subf %8, %3 : vector<16x128xf32>
    %10 = math.log %9 : vector<16x128xf32>
    %cst_5 = arith.constant -1.000000e+02 : f32
    %11 = vector.broadcast %cst_5 : f32 to vector<16x128xf32>
    %12 = arith.maximumf %10, %11 : vector<16x128xf32>
    %13 = arith.mulf %4, %7 : vector<16x128xf32>
    %cst_6 = arith.constant 1.000000e+00 : f32
    %14 = vector.broadcast %cst_6 : f32 to vector<16x128xf32>
    %15 = arith.subf %14, %4 : vector<16x128xf32>
    %16 = arith.mulf %15, %12 : vector<16x128xf32>
    %17 = arith.addf %13, %16 : vector<16x128xf32>
    %cst_7 = arith.constant 0.000000e+00 : f32
    %18 = vector.broadcast %cst_7 : f32 to vector<16x128xf32>
    %19 = arith.subf %18, %17 : vector<16x128xf32>
    %cst_8 = arith.constant 0.000000e+00 : f32
    %20 = vector.broadcast %cst_8 : f32 to vector<16x128xf32>
    %21 = arith.subf %20, %19 : vector<16x128xf32>
    %22 = math.exp %21 : vector<16x128xf32>
    %cst_9 = arith.constant 1.000000e+00 : f32
    %23 = vector.broadcast %cst_9 : f32 to vector<16x128xf32>
    %24 = arith.subf %23, %22 : vector<16x128xf32>
    %25 = arith.mulf %24, %24 : vector<16x128xf32>
    %cst_10 = arith.constant 1.000000e+00 : f32
    %26 = vector.broadcast %cst_10 : f32 to vector<16x128xf32>
    %27 = arith.mulf %26, %25 : vector<16x128xf32>
    %28 = arith.mulf %27, %19 : vector<16x128xf32>
    %c0_11 = arith.constant 0 : index
    %c0_12 = arith.constant 0 : index
    %29 = vector.load %arg4[%c0_11, %c0_12] : memref<8x128xf32, #tpu.memory_space<vmem>>, vector<8x128xf32>
    %30 = vector.shape_cast %28 : vector<16x128xf32> to vector<2x8x128xf32>
    %cst_13 = arith.constant dense<0.000000e+00> : vector<8x128xf32>
    %31 = vector.multi_reduction <add>, %30, %cst_13 [0] : vector<2x8x128xf32> to vector<8x128xf32>
    %32 = arith.addf %29, %31 : vector<8x128xf32>
    %c0_14 = arith.constant 0 : index
    %c0_15 = arith.constant 0 : index
    %33 = vector.load %arg4[%c0_14, %c0_15] : memref<8x128xf32, #tpu.memory_space<vmem>>, vector<8x128xf32>
    tpu.vector_store %arg4[%c0_14, %c0_15], %32 {strides = array<i32>} : memref<8x128xf32, #tpu.memory_space<vmem>>, vector<8x128xf32>,
    return
  }
  func.func @transform_0(%arg0: i32, %arg1: i32) -> (i32, i32) {
    %c1_i32 = arith.constant 1 : i32
    %0 = arith.muli %arg0, %c1_i32 : i32
    %1 = arith.addi %0, %arg1 : i32
    %c0_i32 = arith.constant 0 : i32
    %c0_i32_0 = arith.constant 0 : i32
    return %1, %c0_i32 : i32, i32
  }
  func.func @transform_1(%arg0: i32, %arg1: i32) -> (i32, i32) {
    %c1_i32 = arith.constant 1 : i32
    %0 = arith.muli %arg0, %c1_i32 : i32
    %1 = arith.addi %0, %arg1 : i32
    %c0_i32 = arith.constant 0 : i32
    %c0_i32_0 = arith.constant 0 : i32
    return %1, %c0_i32 : i32, i32
  }
  func.func @transform_2(%arg0: i32, %arg1: i32) -> (i32, i32) {
    %c0_i32 = arith.constant 0 : i32
    %c0_i32_0 = arith.constant 0 : i32
    return %arg0, %c0_i32 : i32, i32
  }
}

</mosaic_0001>

<bundles_post_ra>
// kernel: tpu_custom_call.1
= control target key start
LH: loop header
LB: loop body
LE: loop exit
PB: predicated region body
PF: predicated region fallthrough
CT: control target
= control target key end

     0   :  { %7 = vsyncpa [#allocation3], 0  ;;  %s263_s0 = inlined_call_operand.hbm [shape: f32[16,128], index: 0, kind: input, shape index: {}]   ;;  %s264_s1 = inlined_call_operand.hbm [shape: f32[16,128], index: 1, kind: input, shape index: {}]   ;;  %s265_s2 = inlined_call_operand.hbm [shape: f32[8,128], index: 2, kind: output, shape index: {}]  }
   0x1   :  { %8 = vsyncpa [#allocation6], 0 }
   0x2   :  { %9 = vsyncpa [#allocation4], 0  ;;  %s207_s9 = smov [#allocation2]   ;;  %s135_s13 = scalar_lea.hbm %s263_s0, 256 }
   0x3   :  { %s19_s10 = sshll.u32 %s207_s9, 4  ;;  %p136_p0 = scmp.ne.s32.totalorder %s263_s0, %s135_s13  ;;  %s20_s10 = int_to_ptr.vmem [resolvable:$true] %s19_s10 }
   0x4   :  { %p139_p1 = scmp.lt.u32.totalorder %s135_s13, %s263_s0 }
   0x6   :  { %p141_p2 = pnand %p139_p1, %p136_p0 }
   0x8   :  { %144 = shalt.err (!%p141_p2)
}
   0x9   :  { %s145_s18 = scalar_lea.vmem %s20_s10, 256  ;;  %p150_p4 = scmp.lt.s32.totalorder %s20_s10, %s20_s10 }
   0xa   :  { %p146_p3 = scmp.ne.s32.totalorder %s20_s10, %s145_s18  ;;  %p151_p5 = scmp.lt.s32.totalorder %s145_s18, %s145_s18 }
   0xc   :  { %p152_p6 = por %p151_p5, %p150_p4 }
   0xe   :  { %p153_p7 = pnand %p152_p6, %p146_p3 }
  0x10   :  { %156 = shalt.err (!%p153_p7)
}
  0x11   :  { %s208_s19 = smov 128   ;;  %s209_s20 = smov 8  }
  0x12   :  { %25 = dma.hbm_to_vmem [thread:$0]  %s263_s0, 256, %s20_s10, [#allocation3], %s208_s19, %s208_s19, %s209_s20  }
  0x13   :  { %s210_s23 = smov [#allocation5]   ;;  %s157_s27 = scalar_lea.hbm %s264_s1, 256 }
  0x14   :  { %s35_s24 = sshll.u32 %s210_s23, 4  ;;  %p158_p8 = scmp.ne.s32.totalorder %s264_s1, %s157_s27  ;;  %s36_s24 = int_to_ptr.vmem [resolvable:$true] %s35_s24 }
  0x15   :  { %p161_p9 = scmp.lt.u32.totalorder %s157_s27, %s264_s1 }
  0x17   :  { %p163_p10 = pnand %p161_p9, %p158_p8 }
  0x19   :  { %166 = shalt.err (!%p163_p10)
}
  0x1a   :  { %s167_s4 = scalar_lea.vmem %s36_s24, 256  ;;  %p172_p12 = scmp.lt.s32.totalorder %s36_s24, %s36_s24 }
  0x1b   :  { %p168_p11 = scmp.ne.s32.totalorder %s36_s24, %s167_s4  ;;  %p173_p13 = scmp.lt.s32.totalorder %s167_s4, %s167_s4 }
  0x1d   :  { %p174_p0 = por %p173_p13, %p172_p12 }
  0x1f   :  { %p175_p1 = pnand %p174_p0, %p168_p11 }
  0x21   :  { %178 = shalt.err (!%p175_p1)
}
  0x22   :  { %41 = dma.hbm_to_vmem [thread:$0]  %s264_s1, 256, %s36_s24, [#allocation6], %s208_s19, %s208_s19, %s209_s20  }
  0x23   :  { %201 = dma.done.wait [#allocation3], 256  }
  0x24   :  { %202 = vsyncadd [#allocation3], 4294967040 }
  0x25   :  { %203 = dma.done.wait [#allocation6], 256  }
  0x26   :  { %204 = vsyncadd [#allocation6], 4294967040  ;;  %v57_v0 = vld [vmem:[#allocation2] sm:$0xff]  ;;  %v58_v1 = vld [vmem:[#allocation2 + $0x8] sm:$0xff]  ;;  %s211_s1 = smov [#allocation7]  }
  0x27   :  { %123 = vlog2.f32 %v57_v0  ;;  %v67_v2 = vsub.f32 1.0, %v57_v0  ;;  %v68_v3 = vsub.f32 1.0, %v58_v1  ;;  %v59_v5 = vld [vmem:[#allocation5] sm:$0xff]  ;;  %v60_v7 = vld [vmem:[#allocation5 + $0x8] sm:$0xff]  ;;  %s107_s6 = sshll.u32 %s211_s1, 4  ;;  %s108_s6 = int_to_ptr.vmem [resolvable:$true] %s107_s6 }
  0x28   :  { %125 = vlog2.f32 %v58_v1  ;;  %v77_v14 = vsub.f32 1.0, %v59_v5  ;;  %v78_v17 = vsub.f32 1.0, %v60_v7  ;;  %s179_s7 = scalar_lea.vmem %s108_s6, 128  ;;  %p184_p3 = scmp.lt.s32.totalorder %s108_s6, %s108_s6 }
  0x29   :  { %127 = vlog2.f32 %v67_v2  ;;  %p180_p2 = scmp.ne.s32.totalorder %s108_s6, %s179_s7  ;;  %p185_p4 = scmp.lt.s32.totalorder %s179_s7, %s179_s7 }
  0x2a   :  { %129 = vlog2.f32 %v68_v3 }
  0x2b   :  { %p186_p5 = por %p185_p4, %p184_p3 }
  0x2d   :  { %p187_p6 = pnand %p186_p5, %p180_p2 }
  0x31   :  { %v124_v4 = vpop.eup %123 }
  0x32   :  { %v126_v6 = vpop.eup %125  ;;  %v62_v8 = vmul.f32 0.6931472, %v124_v4 }
  0x33   :  { %v128_v9 = vpop.eup %127  ;;  %v64_v10 = vmul.f32 0.6931472, %v126_v6 }
  0x34   :  { %v130_v11 = vpop.eup %129  ;;  %v65_v12 = vmax.f32 %v62_v8, -100.0  ;;  %v70_v13 = vmul.f32 0.6931472, %v128_v9 }
  0x35   :  { %v66_v15 = vmax.f32 %v64_v10, -100.0  ;;  %v72_v16 = vmul.f32 0.6931472, %v130_v11 }
  0x36   :  { %v73_v18 = vmax.f32 %v70_v13, -100.0  ;;  %v75_v19 = vmul.f32 %v65_v12, %v59_v5 }
  0x37   :  { %v74_v20 = vmax.f32 %v72_v16, -100.0  ;;  %v76_v21 = vmul.f32 %v66_v15, %v60_v7 }
  0x38   :  { %v79_v22 = vmul.f32 %v77_v14, %v73_v18 }
  0x39   :  { %v80_v23 = vmul.f32 %v78_v17, %v74_v20 }
  0x3a   :  { %v81_v24 = vadd.f32 %v79_v22, %v75_v19 }
  0x3b   :  { %v82_v25 = vadd.f32 %v80_v23, %v76_v21 }
  0x3c   :  { %v83_v26 = vsub.f32 0.0, %v81_v24 }
  0x3d   :  { %v84_v27 = vsub.f32 0.0, %v82_v25 }
  0x3e   :  { %v85_v28 = vsub.f32 0.0, %v83_v26 }
  0x3f   :  { %v86_v29 = vsub.f32 0.0, %v84_v27 }
  0x40   :  { %v87_v30 = vmul.f32 1.442695, %v85_v28 }
  0x41   :  { %v89_v31 = vmul.f32 1.442695, %v86_v29 }
  0x42   :  { %131 = vpow2.f32 %v87_v30 }
  0x43   :  { %133 = vpow2.f32 %v89_v31 }
  0x4c   :  { %v132_v32 = vpop.eup %131 }
  0x4d   :  { %v134_v33 = vpop.eup %133  ;;  %v91_v34 = vsub.f32 1.0, %v132_v32 }
  0x4e   :  { %v92_v35 = vsub.f32 1.0, %v134_v33 }
  0x4f   :  { %v93_v36 = vmul.f32 %v91_v34, %v91_v34 }
  0x50   :  { %v94_v37 = vmul.f32 %v92_v35, %v92_v35 }
  0x51   :  { %v95_v38 = vmul.f32 %v93_v36, %v83_v26 }
  0x52   :  { %v96_v39 = vmul.f32 %v94_v37, %v84_v27 }
  0x54   :  { %v98_v40 = vadd.f32 %v96_v39, %v95_v38 }
  0x56   :  { %100 = vst [vmem:[#allocation7] sm:$0xff] %v98_v40 }
  0x57   :  { %190 = shalt.err (!%p187_p6)
}
  0x58   :  { %s191_s10 = scalar_lea.hbm %s265_s2, 128 }
  0x59   :  { %p192_p7 = scmp.ne.s32.totalorder %s265_s2, %s191_s10  ;;  %p195_p8 = scmp.lt.u32.totalorder %s191_s10, %s265_s2 }
  0x5b   :  { %p197_p9 = pnand %p195_p8, %p192_p7 }
  0x5d   :  { %200 = shalt.err (!%p197_p9)
}
  0x5e   :  { %110 = dma.vmem_to_hbm [thread:$0]  %s108_s6, 128, %s265_s2, [#allocation4]  }
  0x5f   :  { %205 = dma.done.wait [#allocation4], 128  }
  0x60   :  { %206 = vsyncadd [#allocation4], 4294967168 }
  0x61   :  { %114 = vsyncpa [#allocation3], 1 }
  0x62   :  { %115 = vsyncpa [#allocation6], 1 }
  0x63   :  { %116 = vsyncpa [#allocation4], 1 }

</bundles_post_ra>
